<compile_context>
chip_gen: v7x
topology: tpu7x:2x2x1
jax: 0.10.0
libtpu: 0.0.40
codegen_flags: <defaults>
</compile_context>

<pallas_src>
import functools

import numpy as np

import jax
import jax.numpy as jnp
from jax import lax
from jax.experimental import pallas as pl
from jax.experimental.pallas import tpu as pltpu


# ----------------------------------------------------------------------------
# Tiling / VMEM helpers
# ----------------------------------------------------------------------------
def _vmem_budget_bytes():
    """~7/8 of the chip's physical VMEM (56 MiB on v7x, 112 MiB on v5e/v6e)."""
    try:
        cap = int(pltpu.get_tpu_info().vmem_capacity_bytes)
    except Exception:
        cap = 64 << 20
    return (cap // 8) * 7


def _pick_prep_tile(n_rows, dim, in_bytes, out_bytes, budget):
    """Row tile for the normalize/cast pre-pass (multiple of 8, or full rows)."""
    divs8 = [t for t in range(8, n_rows + 1, 8) if n_rows % t == 0]
    if not divs8:
        return n_rows
    fitting = [t for t in divs8
               if t * dim * (2 * in_bytes + 2 * out_bytes + 8) <= budget]
    return max(fitting) if fitting else min(divs8)


def _pick_row_tile(batch_size, dim, key_bytes, budget, prefer16):
    """Query-row tile TM for the main kernel, derived from the VMEM budget."""
    def step_bytes(t):
        # two (TM, 2B) f32 sim slabs + exp/where/iota temps + query tiles.
        return 8 * t * (2 * batch_size) * 4 + 6 * t * dim * 4

    divs = [t for t in range(1, batch_size + 1) if batch_size % t == 0]
    fitting = [t for t in divs
               if key_bytes + step_bytes(t) + (4 << 20) <= budget]
    if not fitting:
        # TODO(synk): flash-style key-column tiling for huge 2B*D; for now take
        # the smallest tile and rely on the raised vmem limit.
        fitting = [divs[0]]

    aligned = [t for t in fitting if t % 8 == 0]
    if not aligned:
        # No 8-row-aligned tile exists: take the largest fitting tile (usually
        # the full batch -> static, alignment-free row offsets).
        return max(fitting)
    if prefer16:
        a16 = [t for t in aligned if t % 16 == 0]
        aligned = a16 or aligned
    # Prefer >= 2 grid blocks (ideally an even count) so the "parallel" grid
    # axis can be split across both v7x TensorCores.
    multi = [t for t in aligned if batch_size // t >= 2]
    if multi:
        even = [t for t in multi if (batch_size // t) % 2 == 0]
        return max(even or multi)
    return max(aligned)


# ----------------------------------------------------------------------------
# Kernels
# ----------------------------------------------------------------------------
def _prep_kernel(reps_ref, out_ref, *, use_cosine):
    """Normalize (cosine path) + cast a row tile of the concatenated reps, once."""
    x = reps_ref[...].astype(jnp.float32)
    if use_cosine:
        # x / max(||x||, 1e-8): torch.nn.CosineSimilarity's per-vector clamp;
        # rsqrt runs on the EUP.
        ssq = jnp.sum(x * x, axis=-1, keepdims=True)
        x = x * lax.rsqrt(jnp.maximum(ssq, 1e-16))
    out_ref[...] = x.astype(out_ref.dtype)


def _ntxent_kernel(keys_ref, out_ref, *, tm, batch_size, inv_temp, mm_dtype):
    b = batch_size
    n = 2 * b
    g = pl.program_id(0)
    r0 = pl.multiple_of(g * tm, tm)          # zjs-half query rows
    r1 = pl.multiple_of(b + g * tm, tm)      # zis-half query rows

    keys = keys_ref[...]                                   # (2B, D), resident
    qj = keys_ref[pl.ds(r0, tm), :]                        # (TM, D)
    qi = keys_ref[pl.ds(r1, tm), :]                        # (TM, D)

    qj_f = qj.astype(jnp.float32)
    qi_f = qi.astype(jnp.float32)

    # Positive logit sim(zjs[r], zis[r]) / T -- the same value serves row r of
    # the zjs half and row B + r of the zis half.
    pos = jnp.sum(qj_f * qi_f, axis=-1, keepdims=True) * inv_temp     # (TM, 1)

    # Similarities against ALL 2B keys in a single matmul per half; 1/T folded
    # into the small query operand; contraction over the shared last dim.
    dn = (((1,), (1,)), ((), ()))
    qj_m = (qj_f * inv_temp).astype(mm_dtype)
    qi_m = (qi_f * inv_temp).astype(mm_dtype)
    s_j = lax.dot_general(qj_m, keys, dn, preferred_element_type=jnp.float32)
    s_i = lax.dot_general(qi_m, keys, dn, preferred_element_type=jnp.float32)

    # Mask each row's self-similarity (column r0 + row for the zjs half,
    # column B + r0 + row for the zis half).  The positive column stays in the
    # denominator, matching the PyTorch logits = [pos | negatives] layout.
    col = lax.broadcasted_iota(jnp.int32, (tm, n), 1)
    row = lax.broadcasted_iota(jnp.int32, (tm, n), 0)
    neg_big = jnp.float32(-1e30)               # exp -> exactly 0 in f32
    s_j = jnp.where(col == row + r0, neg_big, s_j)
    s_i = jnp.where(col == row + r1, neg_big, s_i)

    def _row_lse(s):
        m = jnp.max(s, axis=-1, keepdims=True)
        return m + jnp.log(jnp.sum(jnp.exp(s - m), axis=-1, keepdims=True))

    partial = jnp.sum(_row_lse(s_j) - pos) + jnp.sum(_row_lse(s_i) - pos)
    # Lane-dense, unmasked store of this block's partial sum.
    out_ref[...] = jnp.full(out_ref.shape, partial, dtype=jnp.float32)


# ----------------------------------------------------------------------------
# Wrapper
# ----------------------------------------------------------------------------
def ntxent_loss(zis, zjs, *, temperature=0.5, use_cosine_similarity=True,
                row_tile=None, matmul_dtype=None):
    """zis, zjs: (B, D).  Returns the scalar NT-Xent loss (float32)."""
    assert zis.shape == zjs.shape and zis.ndim == 2
    batch_size, dim = zis.shape
    n = 2 * batch_size
    inv_temp = float(1.0 / temperature)

    # MXU operand dtype: bf16 inputs keep bf16 operands (f32 accumulation).
    # On v5e, pass matmul_dtype=jnp.bfloat16 for f32 inputs to skip the
    # multi-pass f32 MXU emulation (LSE math stays f32 either way).
    if matmul_dtype is None:
        matmul_dtype = jnp.bfloat16 if zis.dtype == jnp.bfloat16 else jnp.float32
    mm_dtype = jnp.dtype(matmul_dtype)

    budget = _vmem_budget_bytes()

    # ---- Pre-pass: concat + (cosine) normalize + cast, exactly ONCE --------
    reps = jnp.concatenate([zjs, zis], axis=0)            # (2B, D), torch order
    if use_cosine_similarity or reps.dtype != mm_dtype:
        pt = _pick_prep_tile(n, dim, reps.dtype.itemsize, mm_dtype.itemsize,
                             budget // 2)
        keys = pl.pallas_call(
            functools.partial(_prep_kernel,
                              use_cosine=bool(use_cosine_similarity)),
            out_shape=jax.ShapeDtypeStruct((n, dim), mm_dtype),
            grid=(n // pt,),
            in_specs=[pl.BlockSpec((pt, dim), lambda g: (g, 0))],
            out_specs=pl.BlockSpec((pt, dim), lambda g: (g, 0)),
            compiler_params=pltpu.CompilerParams(
                dimension_semantics=("parallel",),
                vmem_limit_bytes=budget),
        )(reps)
    else:
        keys = reps    # dot-product similarity, already in the matmul dtype

    # ---- Main pass ----------------------------------------------------------
    key_bytes = n * dim * mm_dtype.itemsize          # single-buffered resident
    if row_tile is not None:
        tm = int(row_tile)
    else:
        tm = _pick_row_tile(batch_size, dim, key_bytes, budget,
                            prefer16=(mm_dtype == jnp.bfloat16))
    assert batch_size % tm == 0
    num_blocks = batch_size // tm

    kernel = functools.partial(
        _ntxent_kernel, tm=tm, batch_size=batch_size, inv_temp=inv_temp,
        mm_dtype=mm_dtype)

    def _call(single_buffer_keys):
        if single_buffer_keys:
            # Constant-index resident keys: double buffering buys nothing, so
            # single-buffer them and halve the resident VMEM footprint.
            keys_spec = pl.BlockSpec((n, dim), lambda g: (0, 0),
                                     pipeline_mode=pl.Buffered(1))
        else:
            keys_spec = pl.BlockSpec((n, dim), lambda g: (0, 0))
        return pl.pallas_call(
            kernel,
            out_shape=jax.ShapeDtypeStruct((num_blocks, 8, 128), jnp.float32),
            grid=(num_blocks,),
            in_specs=[keys_spec],
            out_specs=pl.BlockSpec((1, 8, 128), lambda g: (g, 0, 0)),
            compiler_params=pltpu.CompilerParams(
                dimension_semantics=("parallel",),
                vmem_limit_bytes=budget),
        )(keys)

    try:
        partials = _call(True)
    except Exception:
        # Lowering without single-buffer support: fall back to default buffering.
        partials = _call(False)

    return jnp.sum(partials[:, 0, 0]) / n


# ----------------------------------------------------------------------------
# Pure-JAX reference (mirrors the PyTorch forward) + self-tests
# ----------------------------------------------------------------------------
def _ntxent_ref(zis, zjs, temperature, use_cosine):
    b = zis.shape[0]
    n = 2 * b
    reps = jnp.concatenate([zjs, zis], axis=0).astype(jnp.float32)
    if use_cosine:
        norms = jnp.maximum(jnp.linalg.norm(reps, axis=-1, keepdims=True), 1e-8)
        rn = reps / norms
        sim = rn @ rn.T
    else:
        sim = reps @ reps.T
    l_pos = jnp.diagonal(sim, offset=b)
    r_pos = jnp.diagonal(sim, offset=-b)
    positives = jnp.concatenate([l_pos, r_pos]).reshape(n, 1)
    mask_np = ~(np.eye(n, dtype=bool)
                | np.eye(n, k=b, dtype=bool)
                | np.eye(n, k=-b, dtype=bool))
    neg_idx = np.stack([np.nonzero(mask_np[r])[0] for r in range(n)])  # (n, n-2)
    negatives = jnp.take_along_axis(sim, jnp.asarray(neg_idx), axis=1)
    logits = jnp.concatenate([positives, negatives], axis=1) / temperature
    lse = jax.scipy.special.logsumexp(logits, axis=-1)
    return jnp.sum(lse - logits[:, 0]) / n


if __name__ == "__main__":
    key = jax.random.PRNGKey(0)
    k1, k2, k3, k4 = jax.random.split(key, 4)
    temperature = 0.5

    # Case 1: small shape, cosine similarity.
    B, D = 4, 32
    zis = jax.random.normal(k1, (B, D), dtype=jnp.float32)
    zjs = jax.random.normal(k2, (B, D), dtype=jnp.float32)
    loss = jax.block_until_ready(
        ntxent_loss(zis, zjs, temperature=temperature, use_cosine_similarity=True))
    ref = _ntxent_ref(zis, zjs, temperature, True)
    assert jnp.allclose(loss, ref, rtol=1e-5, atol=1e-5), (loss, ref)

    # Case 2: dot-product similarity branch (no prep pass needed).
    loss2 = jax.block_until_ready(
        ntxent_loss(zis, zjs, temperature=temperature, use_cosine_similarity=False))
    ref2 = _ntxent_ref(zis, zjs, temperature, False)
    assert jnp.allclose(loss2, ref2, rtol=1e-5, atol=1e-5), (loss2, ref2)

    # Case 3: multi-block grid (2 row tiles) to exercise tiling + parallel axis.
    B2, D2 = 16, 128
    zis2 = jax.random.normal(k3, (B2, D2), dtype=jnp.float32)
    zjs2 = jax.random.normal(k4, (B2, D2), dtype=jnp.float32)
    loss3 = jax.block_until_ready(
        ntxent_loss(zis2, zjs2, temperature=temperature,
                    use_cosine_similarity=True, row_tile=8))
    ref3 = _ntxent_ref(zis2, zjs2, temperature, True)
    assert jnp.allclose(loss3, ref3, rtol=1e-5, atol=1e-5), (loss3, ref3)

    # Case 4: bf16 inputs (bf16 MXU operands, f32 LSE) with looser tolerance.
    zis4 = zis2.astype(jnp.bfloat16)
    zjs4 = zjs2.astype(jnp.bfloat16)
    loss4 = jax.block_until_ready(
        ntxent_loss(zis4, zjs4, temperature=temperature,
                    use_cosine_similarity=True))
    ref4 = _ntxent_ref(zis4, zjs4, temperature, True)
    assert jnp.allclose(loss4, ref4, rtol=3e-2, atol=3e-2), (loss4, ref4)

    print("KERNEL_OK")
</pallas_src>

<mosaic_0001>
module attributes {stable_mosaic.version = 11 : i64} {
  func.func @_prep_kernel(%arg0: i32, %arg1: memref<8x32xf32, #tpu.memory_space<vmem>>, %arg2: memref<8x32xf32, #tpu.memory_space<vmem>>) attributes {dimension_semantics = [#tpu.dimension_semantics<parallel>], iteration_bounds = array<i64: 1>, scalar_prefetch = 0 : i64, scratch_operands = 0 : i64, tpu.core_type = #tpu.core_type<tc>, window_params = [{transform_indices = @transform_0, window_bounds = array<i64: 8, 32>}, {transform_indices = @transform_1, window_bounds = array<i64: 8, 32>}]} {
    %c0 = arith.constant 0 : index
    %c0_0 = arith.constant 0 : index
    %0 = vector.load %arg1[%c0, %c0_0] : memref<8x32xf32, #tpu.memory_space<vmem>>, vector<8x32xf32>
    %1 = arith.mulf %0, %0 : vector<8x32xf32>
    %cst = arith.constant dense<0.000000e+00> : vector<8xf32>
    %2 = vector.multi_reduction <add>, %1, %cst [1] : vector<8x32xf32> to vector<8xf32>
    %3 = vector.shape_cast %2 : vector<8xf32> to vector<8x1xf32>
    %cst_1 = arith.constant 1.000000e-16 : f32
    %4 = vector.broadcast %cst_1 : f32 to vector<8x1xf32>
    %5 = arith.maximumf %3, %4 : vector<8x1xf32>
    %6 = math.rsqrt %5 : vector<8x1xf32>
    %7 = vector.broadcast %6 : vector<8x1xf32> to vector<8x32xf32>
    %8 = arith.mulf %0, %7 : vector<8x32xf32>
    %c0_2 = arith.constant 0 : index
    %c0_3 = arith.constant 0 : index
    %9 = vector.load %arg2[%c0_2, %c0_3] : memref<8x32xf32, #tpu.memory_space<vmem>>, vector<8x32xf32>
    tpu.vector_store %arg2[%c0_2, %c0_3], %8 {strides = array<i32>} : memref<8x32xf32, #tpu.memory_space<vmem>>, vector<8x32xf32>,
    return
  }
  func.func @transform_0(%arg0: i32) -> (i32, i32) {
    %c0_i32 = arith.constant 0 : i32
    %c0_i32_0 = arith.constant 0 : i32
    return %arg0, %c0_i32 : i32, i32
  }
  func.func @transform_1(%arg0: i32) -> (i32, i32) {
    %c0_i32 = arith.constant 0 : i32
    %c0_i32_0 = arith.constant 0 : i32
    return %arg0, %c0_i32 : i32, i32
  }
}

</mosaic_0001>

<bundles_post_ra>
// kernel: tpu_custom_call.1
= control target key start
LH: loop header
LB: loop body
LE: loop exit
PB: predicated region body
PF: predicated region fallthrough
CT: control target
= control target key end

     0   :  { %6 = vsyncpa [#allocation3], 0  ;;  %s134_s0 = inlined_call_operand.hbm [shape: f32[8,32], index: 0, kind: input, shape index: {}]   ;;  %s135_s1 = inlined_call_operand.hbm [shape: f32[8,32], index: 1, kind: output, shape index: {}]  }
   0x1   :  { %7 = vsyncpa [#allocation4], 0  ;;  %s98_s6 = smov [#allocation2]   ;;  %s50_s10 = scalar_lea.hbm %s134_s0, 128 }
   0x2   :  { %s14_s7 = sshll.u32 %s98_s6, 4  ;;  %p51_p0 = scmp.ne.s32.totalorder %s134_s0, %s50_s10  ;;  %s15_s7 = int_to_ptr.vmem [resolvable:$true] %s14_s7 }
   0x3   :  { %p54_p1 = scmp.lt.u32.totalorder %s50_s10, %s134_s0 }
   0x5   :  { %p56_p2 = pnand %p54_p1, %p51_p0 }
   0x7   :  { %59 = shalt.err (!%p56_p2)
}
   0x8   :  { %s60_s15 = scalar_lea.vmem %s15_s7, 128  ;;  %p65_p4 = scmp.lt.s32.totalorder %s15_s7, %s15_s7 }
   0x9   :  { %p61_p3 = scmp.ne.s32.totalorder %s15_s7, %s60_s15  ;;  %p66_p5 = scmp.lt.s32.totalorder %s60_s15, %s60_s15 }
   0xb   :  { %p67_p6 = por %p66_p5, %p65_p4 }
   0xd   :  { %p68_p7 = pnand %p67_p6, %p61_p3 }
   0xf   :  { %71 = shalt.err (!%p68_p7)
}
  0x10   :  { %17 = dma.hbm_to_vmem [thread:$0]  %s134_s0, 128, %s15_s7, [#allocation3]  }
  0x11   :  { %94 = dma.done.wait [#allocation3], 128  }
  0x12   :  { %95 = vsyncadd [#allocation3], 4294967168  ;;  %v21_v0 = vld [vmem:[#allocation2] sm:$0xff]  ;;  %vm23_vm0 = vcmask 261120   ;;  %s99_s18 = smov [#allocation5]  }
  0x13   :  { %v22_v1 = vmul.f32 %v21_v0, %v21_v0  ;;  %s37_s19 = sshll.u32 %s99_s18, 4  ;;  %s38_s19 = int_to_ptr.vmem [resolvable:$true] %s37_s19 }
  0x14   :  { %s72_s20 = scalar_lea.vmem %s38_s19, 128  ;;  %p77_p9 = scmp.lt.s32.totalorder %s38_s19, %s38_s19 }
  0x15   :  { %v24_v2 = vsel %vm23_vm0, %v22_v1, 0.0  ;;  %p73_p8 = scmp.ne.s32.totalorder %s38_s19, %s72_s20  ;;  %p78_p10 = scmp.lt.s32.totalorder %s72_s20, %s72_s20 }
  0x16   :  { %25 = vadd.xlane.f32.xlu0 %v24_v2 }
  0x17   :  { %p79_p11 = por %p78_p10, %p77_p9 }
  0x19   :  { %p80_p12 = pnand %p79_p11, %p73_p8 }
  0xa3   :  { %v26_v3 = vpop.xlane.xlu0 %25 }
  0xa4   :  { %v27_v4 = vmax.f32 %v26_v3, 1e-16 }
  0xa6   :  { %48 = vrsqrt.f32 %v27_v4 }
  0xb0   :  { %v49_v5 = vpop.eup %48 }
  0xb1   :  { %v29_v6 = vmul.f32 %v49_v5, %v21_v0 }
  0xb3   :  { %30 = vst.msk [vmem:[#allocation5] sm:$0xff] %vm23_vm0, %v29_v6 }
  0xb4   :  { %83 = shalt.err (!%p80_p12)
}
  0xb5   :  { %s84_s22 = scalar_lea.hbm %s135_s1, 128 }
  0xb6   :  { %p85_p13 = scmp.ne.s32.totalorder %s135_s1, %s84_s22  ;;  %p88_p0 = scmp.lt.u32.totalorder %s84_s22, %s135_s1 }
  0xb8   :  { %p90_p1 = pnand %p88_p0, %p85_p13 }
  0xba   :  { %93 = shalt.err (!%p90_p1)
}
  0xbb   :  { %40 = dma.vmem_to_hbm [thread:$0]  %s38_s19, 128, %s135_s1, [#allocation4]  }
  0xbc   :  { %96 = dma.done.wait [#allocation4], 128  }
  0xbd   :  { %97 = vsyncadd [#allocation4], 4294967168 }
  0xbe   :  { %44 = vsyncpa [#allocation3], 1 }
  0xbf   :  { %45 = vsyncpa [#allocation4], 1 }

</bundles_post_ra>
